<compile_context>
chip_gen: v5e
topology: v5e:2x2
jax: 0.10.0
libtpu: 0.0.40
codegen_flags: <defaults>
</compile_context>

<pallas_src>
import math

import jax
import jax.numpy as jnp
from jax.experimental import pallas as pl
from jax.experimental.pallas import tpu as pltpu

INPUT_SIZE = 25
HIDDEN_SIZE = 5
K_PAD = 32     # padded contraction dim: 25 (x) + 5 (h) + 1 (bias/ones) + 1 (zero pad)
H_PAD = 128    # lane-dense padded output width


def _round_up(n, m):
    return ((n + m - 1) // m) * m


def rnn_cell_kernel(xh_ref, w_ref, out_ref):
    """Fused RNNCell + ReLU: single (TB, 32) x (32, 128) MXU contraction.

    xh_ref:  (TB, 32)   f32   [x | h | 1 | 0]
    w_ref:   (32, 128)  f32   [W_ih^T ; W_hh^T ; b_ih+b_hh ; 0], zero-padded lanes
    out_ref: (TB, 128)  f32   relu(tanh(.)) — lane-dense, sliced in the wrapper
    """
    z = jnp.dot(xh_ref[...], w_ref[...], preferred_element_type=jnp.float32)
    out_ref[...] = jnp.maximum(jnp.tanh(z), 0.0)  # ReLU


def pack_params(w_ih, w_hh, b_ih, b_hh):
    """One-time parameter packing (hoisted out of the forward call).

    Returns a (32, 128) f32 matrix:
      rows  0:25  -> W_ih^T
      rows 25:30  -> W_hh^T
      row     30  -> b_ih + b_hh   (matched by the ones-column in the input)
      row     31  -> 0             (K padding)
      cols  5:128 -> 0             (lane padding)
    """
    w = jnp.zeros((K_PAD, H_PAD), jnp.float32)
    w = w.at[:INPUT_SIZE, :HIDDEN_SIZE].set(w_ih.T.astype(jnp.float32))
    w = w.at[INPUT_SIZE:INPUT_SIZE + HIDDEN_SIZE, :HIDDEN_SIZE].set(
        w_hh.T.astype(jnp.float32))
    w = w.at[INPUT_SIZE + HIDDEN_SIZE, :HIDDEN_SIZE].set(
        (b_ih + b_hh).astype(jnp.float32))
    return w


def simple_rnn_forward(x, states, w_packed, *, batch_tile=512):
    """relu(RNNCell(x, states)) using the prepacked (32, 128) weight."""
    B = x.shape[0]

    # Batch tile: large batches get 512-row tiles (pipelined, parallel axis);
    # tiny batches collapse to one sublane-aligned block.
    tb = min(batch_tile, _round_up(B, 8))
    b_pad = _round_up(B, tb)

    # Per-call glue: fuse activations + ones-column (for the bias row), pad.
    ones = jnp.ones((B, 1), jnp.float32)
    xh = jnp.concatenate(
        [x.astype(jnp.float32), states.astype(jnp.float32), ones], axis=1)
    xh = jnp.pad(xh, ((0, b_pad - B), (0, K_PAD - xh.shape[1])))

    out = pl.pallas_call(
        rnn_cell_kernel,
        out_shape=jax.ShapeDtypeStruct((b_pad, H_PAD), jnp.float32),
        grid_spec=pltpu.PrefetchScalarGridSpec(
            num_scalar_prefetch=0,
            grid=(b_pad // tb,),
            in_specs=[
                pl.BlockSpec((tb, K_PAD), lambda i: (i, 0)),     # activations
                pl.BlockSpec((K_PAD, H_PAD), lambda i: (0, 0)),  # resident weight
            ],
            out_specs=pl.BlockSpec((tb, H_PAD), lambda i: (i, 0)),
        ),
        compiler_params=pltpu.CompilerParams(
            dimension_semantics=("parallel",)),
    )(xh, w_packed)

    return out[:B, :HIDDEN_SIZE]


def init_params(key):
    """Deterministic init mimicking PyTorch RNNCell default:
    uniform(-1/sqrt(hidden), 1/sqrt(hidden))."""
    k = 1.0 / math.sqrt(HIDDEN_SIZE)
    k1, k2, k3, k4 = jax.random.split(key, 4)
    w_ih = jax.random.uniform(k1, (HIDDEN_SIZE, INPUT_SIZE), jnp.float32, -k, k)
    w_hh = jax.random.uniform(k2, (HIDDEN_SIZE, HIDDEN_SIZE), jnp.float32, -k, k)
    b_ih = jax.random.uniform(k3, (HIDDEN_SIZE,), jnp.float32, -k, k)
    b_hh = jax.random.uniform(k4, (HIDDEN_SIZE,), jnp.float32, -k, k)
    return w_ih, w_hh, b_ih, b_hh


def reference_forward(x, states, w_ih, w_hh, b_ih, b_hh):
    """Pure-JAX reference of nn.RNNCell (tanh) followed by ReLU."""
    z = x @ w_ih.T + b_ih + states @ w_hh.T + b_hh
    return jnp.maximum(jnp.tanh(z), 0.0)


if __name__ == "__main__":
    key = jax.random.PRNGKey(0)
    kp, kx, kh = jax.random.split(key, 3)

    B = 2
    w_ih, w_hh, b_ih, b_hh = init_params(kp)
    x = jax.random.normal(kx, (B, INPUT_SIZE), jnp.float32)
    states = jax.random.normal(kh, (B, HIDDEN_SIZE), jnp.float32)

    # One-time packing (hoisted out of the forward path).
    w_packed = jax.block_until_ready(pack_params(w_ih, w_hh, b_ih, b_hh))

    out = simple_rnn_forward(x, states, w_packed)
    out = jax.block_until_ready(out)

    ref = reference_forward(x, states, w_ih, w_hh, b_ih, b_hh)
    assert out.shape == (B, HIDDEN_SIZE)
    assert jnp.allclose(out, ref, atol=1e-5, rtol=1e-5)

    print("KERNEL_OK")
</pallas_src>

<mosaic_0001>
module attributes {stable_mosaic.version = 11 : i64} {
  func.func @rnn_cell_kernel(%arg0: i32, %arg1: memref<8x32xf32, #tpu.memory_space<vmem>>, %arg2: memref<32x128xf32, #tpu.memory_space<vmem>>, %arg3: memref<8x128xf32, #tpu.memory_space<vmem>>) attributes {dimension_semantics = [#tpu.dimension_semantics<parallel>], iteration_bounds = array<i64: 1>, scalar_prefetch = 0 : i64, scratch_operands = 0 : i64, tpu.core_type = #tpu.core_type<tc>, window_params = [{transform_indices = @transform_0, window_bounds = array<i64: 8, 32>}, {pipeline_mode = #tpu.pipeline_mode<synchronous>, transform_indices = @transform_1, window_bounds = array<i64: 32, 128>}, {transform_indices = @transform_2, window_bounds = array<i64: 8, 128>}]} {
    %c0 = arith.constant 0 : index
    %c0_0 = arith.constant 0 : index
    %0 = vector.load %arg1[%c0, %c0_0] : memref<8x32xf32, #tpu.memory_space<vmem>>, vector<8x32xf32>
    %c0_1 = arith.constant 0 : index
    %c0_2 = arith.constant 0 : index
    %1 = vector.load %arg2[%c0_1, %c0_2] : memref<32x128xf32, #tpu.memory_space<vmem>>, vector<32x128xf32>
    %cst = arith.constant dense<0.000000e+00> : vector<8x128xf32>
    %2 = tpu.matmul %0, %1, %cst {dimension_numbers = #tpu.dot_dimension_numbers<[1], [0], [0], [1], [0, 0, 1, 1], [], []>} : vector<8x32xf32>, vector<32x128xf32>, vector<8x128xf32> -> vector<8x128xf32>
    %3 = math.tanh %2 : vector<8x128xf32>
    %cst_3 = arith.constant 0.000000e+00 : f32
    %4 = vector.broadcast %cst_3 : f32 to vector<8x128xf32>
    %5 = arith.maximumf %3, %4 : vector<8x128xf32>
    %c0_4 = arith.constant 0 : index
    %c0_5 = arith.constant 0 : index
    %6 = vector.load %arg3[%c0_4, %c0_5] : memref<8x128xf32, #tpu.memory_space<vmem>>, vector<8x128xf32>
    tpu.vector_store %arg3[%c0_4, %c0_5], %5 {strides = array<i32>} : memref<8x128xf32, #tpu.memory_space<vmem>>, vector<8x128xf32>,
    return
  }
  func.func @transform_0(%arg0: i32) -> (i32, i32) {
    %c0_i32 = arith.constant 0 : i32
    %c0_i32_0 = arith.constant 0 : i32
    return %arg0, %c0_i32 : i32, i32
  }
  func.func @transform_1(%arg0: i32) -> (i32, i32) {
    %c0_i32 = arith.constant 0 : i32
    %c0_i32_0 = arith.constant 0 : i32
    %c0_i32_1 = arith.constant 0 : i32
    return %c0_i32, %c0_i32_0 : i32, i32
  }
  func.func @transform_2(%arg0: i32) -> (i32, i32) {
    %c0_i32 = arith.constant 0 : i32
    %c0_i32_0 = arith.constant 0 : i32
    return %arg0, %c0_i32 : i32, i32
  }
}

</mosaic_0001>

<bundles_post_ra>
// kernel: tpu_custom_call.1
= control target key start
LH: loop header
LB: loop body
LE: loop exit
PB: predicated region body
PF: predicated region fallthrough
CT: control target
= control target key end

     0   :  { %7 = vsyncpa [#allocation3], 0  ;;  %s207_s0 = inlined_call_operand.hbm [shape: f32[8,32], index: 0, kind: input, shape index: {}]   ;;  %s208_s1 = inlined_call_operand.hbm [shape: f32[32,128], index: 1, kind: input, shape index: {}]   ;;  %s209_s2 = inlined_call_operand.hbm [shape: f32[8,128], index: 2, kind: output, shape index: {}]  }
   0x1   :  { %8 = vsyncpa [#allocation6], 0 }
   0x2   :  { %9 = vsyncpa [#allocation4], 0  ;;  %s15_s11 = sshll.u32 %s207_s0, 4  ;;  %s178_s12 = smov [#allocation2]   ;;  %s16_s11 = int_to_ptr.hbm [resolvable:$true] %s15_s11 }
   0x3   :  { %s17_s13 = sshll.u32 %s178_s12, 4  ;;  %s25_s16 = sshll.u32 %s208_s1, 4  ;;  %s18_s13 = int_to_ptr.vmem [resolvable:$true] %s17_s13  ;;  %s26_s16 = int_to_ptr.hbm [resolvable:$true] %s25_s16 }
   0x4   :  { %20 = dma.hbm_to_vmem [thread:$0]  %s16_s11, 128, %s18_s13, [#allocation3]  }
   0x5   :  { %s179_s17 = smov [#allocation5]   ;;  %s180_s19 = smov 128  }
   0x6   :  { %s27_s18 = sshll.u32 %s179_s17, 4  ;;  %s181_s20 = smov 8   ;;  %s28_s18 = int_to_ptr.vmem [resolvable:$true] %s27_s18 }
   0x7   :  { %33 = dma.hbm_to_vmem [thread:$0]  %s26_s16, 512, %s28_s18, [#allocation6], %s180_s19, %s180_s19, %s181_s20  }
   0x8   :  { %172 = dma.done.wait [#allocation3], 128  }
   0x9   :  { %173 = vsyncadd [#allocation3], 4294967168 }
   0xa   :  { %174 = dma.done.wait [#allocation6], 512  }
   0xb   :  { %175 = vsyncadd [#allocation6], 4294966784  ;;  %v46_v0 = vld [vmem:[#allocation5 + $0x18] sm:$0xff]  ;;  %v45_v1 = vld [vmem:[#allocation5 + $0x10] sm:$0xff]  ;;  %vm47_vm0 = vcmask 261120   ;;  %s182_s0 = smov [#allocation7]  }
   0xc   :  { %63 = vmatpush.msra.mxu0 %v46_v0  ;;  %v44_v2 = vld [vmem:[#allocation5 + $0x8] sm:$0xff]  ;;  %v43_v3 = vld [vmem:[#allocation5] sm:$0xff]  ;;  %v42_v4 = vld [vmem:[#allocation2] sm:$0xff]  ;;  %s79_s1 = sshll.u32 %s182_s0, 4  ;;  %s81_s23 = sshll.u32 %s209_s2, 4  ;;  %s80_s1 = int_to_ptr.vmem [resolvable:$true] %s79_s1  ;;  %s82_s23 = int_to_ptr.hbm [resolvable:$true] %s81_s23 }
   0xe   :  { %64 = vmatpush.msra.mxu0 %v45_v1 }
  0x10   :  { %65 = vmatpush.msra.mxu0 %v44_v2 }
  0x12   :  { %66 = vmatpush.msra.mxu0 %v43_v3 }
  0x13   :  { %92 = vmatmul.msk.f32.vlgmr.msra.gmra.mxu0 %vm47_vm0, %v42_v4 }
  0x90   :  { %v68_v5 = vpop.f32.mrf.mxu0 }
  0x91   :  { %98 = vtanh.f32 %v68_v5 }
  0x97   :  { %v99_v6 = vpop.eup %98 }
  0x98   :  { %v72_v7 = vmax.f32 %v99_v6, 0.0 }
  0x9a   :  { %73 = vst [vmem:[#allocation7] sm:$0xff] %v72_v7 }
  0x9b   :  { %84 = dma.vmem_to_hbm [thread:$0]  %s80_s1, 128, %s82_s23, [#allocation4]  }
  0x9c   :  { %176 = dma.done.wait [#allocation4], 128  }
  0x9d   :  { %177 = vsyncadd [#allocation4], 4294967168 }
  0x9e   :  { %89 = vsyncpa [#allocation3], 1 }
  0x9f   :  { %90 = vsyncpa [#allocation6], 1 }
  0xa0   :  { %91 = vsyncpa [#allocation4], 1 }

</bundles_post_ra>
